<compile_context>
chip_gen: v7x
topology: tpu7x:2x2x1
jax: 0.10.0
libtpu: 0.0.40
codegen_flags: <defaults>
</compile_context>

<pallas_src>
import functools

import jax
import jax.numpy as jnp
from jax.experimental import pallas as pl
from jax.experimental.pallas import tpu as pltpu

PAD = 128          # all feature dims padded to one f32 vreg lane width
BLOCK_B_MAX = 256  # batch rows per grid step (tile stays tiny in VMEM)
HEAD_NEG = -1e30   # head bias for padded output lanes -> exp() underflows to 0


def _round_up(x, m):
    return (x + m - 1) // m * m


def _actor_kernel(x_ref, w_ref, b_ref, o_ref):
    """Fused forward: two ReLU-Linear layers + linear head + row softmax."""
    x = x_ref[...]                       # (block_b, 128)

    w1 = w_ref[0]                        # (128, 128) each — static index, no copy
    w2 = w_ref[1]
    w3 = w_ref[2]
    b1 = b_ref[0:1, :]                   # (1, 128) each
    b2 = b_ref[1:2, :]
    b3 = b_ref[2:3, :]

    # fc1 + ReLU
    h1 = jnp.maximum(
        jnp.dot(x, w1, preferred_element_type=jnp.float32) + b1, 0.0)
    # fc2 + ReLU
    h2 = jnp.maximum(
        jnp.dot(h1, w2, preferred_element_type=jnp.float32) + b2, 0.0)
    # action_head (padded lanes carry bias -1e30 -> zero probability)
    logits = jnp.dot(h2, w3, preferred_element_type=jnp.float32) + b3

    # softmax over the action axis (last axis)
    m = jnp.max(logits, axis=-1, keepdims=True)
    e = jnp.exp(logits - m)
    denom = jnp.sum(e, axis=-1, keepdims=True)
    o_ref[...] = e * pl.reciprocal(denom, approx=False)


@functools.partial(jax.jit, static_argnames=("n_out",))
def actor_forward(x, w_blob, b_blob, *, n_out):
    """x: (B, n_in) f32. w_blob: (3,128,128), b_blob: (3,128). Returns (B, n_out) probs."""
    batch, n_in = x.shape

    # Pad batch to a sublane multiple and pick a batch tile.
    b8 = _round_up(batch, 8)
    block_b = min(b8, BLOCK_B_MAX)
    b_pad = _round_up(b8, block_b)

    # Lane-pad the input features to 128 (padded rows/cols are zeros).
    x_pad = jnp.zeros((b_pad, PAD), jnp.float32).at[:batch, :n_in].set(
        x.astype(jnp.float32))

    grid = (b_pad // block_b,)

    out = pl.pallas_call(
        _actor_kernel,
        out_shape=jax.ShapeDtypeStruct((b_pad, PAD), jnp.float32),
        grid_spec=pltpu.PrefetchScalarGridSpec(
            num_scalar_prefetch=0,
            grid=grid,
            in_specs=[
                pl.BlockSpec((block_b, PAD), lambda i: (i, 0)),   # x tile
                pl.BlockSpec((3, PAD, PAD), lambda i: (0, 0, 0)),  # weights (resident)
                pl.BlockSpec((3, PAD), lambda i: (0, 0)),          # biases  (resident)
            ],
            out_specs=pl.BlockSpec((block_b, PAD), lambda i: (i, 0)),
        ),
        compiler_params=pltpu.CompilerParams(
            dimension_semantics=("parallel",)),  # batch axis -> both TCs on v7x
    )(x_pad, w_blob, b_blob)

    return out[:batch, :n_out]


def init_actor_params(key, number_of_inputs, number_of_outputs, hidden=100):
    """PyTorch nn.Linear-style init; weights stored as (in_features, out_features)."""
    def linear(key, fan_in, fan_out):
        kw, kb = jax.random.split(key)
        bound = 1.0 / jnp.sqrt(jnp.float32(fan_in))
        w = jax.random.uniform(kw, (fan_in, fan_out), jnp.float32, -bound, bound)
        b = jax.random.uniform(kb, (1, fan_out), jnp.float32, -bound, bound)
        return w, b

    k1, k2, k3 = jax.random.split(key, 3)
    w1, b1 = linear(k1, number_of_inputs, hidden)
    w2, b2 = linear(k2, hidden, hidden)
    w3, b3 = linear(k3, hidden, number_of_outputs)
    return w1, b1, w2, b2, w3, b3


def pack_actor_params(w1, b1, w2, b2, w3, b3):
    """Zero-pad every layer to 128x128 and pack into two contiguous blobs.

    Padded hidden weight rows/cols and hidden biases are 0 (ReLU keeps them 0);
    padded head-bias lanes are -1e30 so softmax assigns them zero probability.
    """
    n_in, hidden = w1.shape
    n_out = w3.shape[1]
    assert n_in <= PAD and hidden <= PAD and w2.shape[1] <= PAD and n_out <= PAD

    w_blob = jnp.zeros((3, PAD, PAD), jnp.float32)
    w_blob = w_blob.at[0, :n_in, :hidden].set(w1)
    w_blob = w_blob.at[1, :hidden, :hidden].set(w2)
    w_blob = w_blob.at[2, :hidden, :n_out].set(w3)

    b_blob = jnp.zeros((3, PAD), jnp.float32)
    b_blob = b_blob.at[0, :hidden].set(b1.reshape(-1))
    b_blob = b_blob.at[1, :hidden].set(b2.reshape(-1))
    b_blob = b_blob.at[2, :].set(jnp.full((PAD,), HEAD_NEG, jnp.float32))
    b_blob = b_blob.at[2, :n_out].set(b3.reshape(-1))
    return w_blob, b_blob


def reference_forward(x, w1, b1, w2, b2, w3, b3):
    h1 = jnp.maximum(x @ w1 + b1, 0.0)
    h2 = jnp.maximum(h1 @ w2 + b2, 0.0)
    logits = h2 @ w3 + b3
    return jax.nn.softmax(logits, axis=1)


if __name__ == "__main__":
    key = jax.random.PRNGKey(0)
    k_params, k_x = jax.random.split(key)

    batch = 8
    number_of_inputs = 12   # observation dimension
    number_of_outputs = 4   # number of discrete actions

    raw_params = init_actor_params(k_params, number_of_inputs, number_of_outputs)
    w_blob, b_blob = pack_actor_params(*raw_params)
    x = jax.random.normal(k_x, (batch, number_of_inputs), jnp.float32)

    probs = actor_forward(x, w_blob, b_blob, n_out=number_of_outputs)
    probs = jax.block_until_ready(probs)

    # sanity check against a pure-JAX reference on the ORIGINAL (unpadded) params
    ref = reference_forward(x, *raw_params)
    assert probs.shape == (batch, number_of_outputs)
    assert jnp.allclose(probs, ref, atol=1e-5, rtol=1e-5)
    assert jnp.allclose(jnp.sum(probs, axis=1), 1.0, atol=1e-5)

    print("KERNEL_OK")
</pallas_src>

<mosaic_0001>
module attributes {stable_mosaic.version = 11 : i64} {
  func.func @_actor_kernel(%arg0: i32, %arg1: memref<8x128xf32, #tpu.memory_space<vmem>>, %arg2: memref<3x128x128xf32, #tpu.memory_space<vmem>>, %arg3: memref<3x128xf32, #tpu.memory_space<vmem>>, %arg4: memref<8x128xf32, #tpu.memory_space<vmem>>) attributes {dimension_semantics = [#tpu.dimension_semantics<parallel>], iteration_bounds = array<i64: 1>, scalar_prefetch = 0 : i64, scratch_operands = 0 : i64, tpu.core_type = #tpu.core_type<tc>, window_params = [{transform_indices = @transform_0, window_bounds = array<i64: 8, 128>}, {pipeline_mode = #tpu.pipeline_mode<synchronous>, transform_indices = @transform_1, window_bounds = array<i64: 3, 128, 128>}, {pipeline_mode = #tpu.pipeline_mode<synchronous>, transform_indices = @transform_2, window_bounds = array<i64: 3, 128>}, {transform_indices = @transform_3, window_bounds = array<i64: 8, 128>}]} {
    %c0 = arith.constant 0 : index
    %c0_0 = arith.constant 0 : index
    %0 = vector.load %arg1[%c0, %c0_0] : memref<8x128xf32, #tpu.memory_space<vmem>>, vector<8x128xf32>
    %c0_1 = arith.constant 0 : index
    %c0_2 = arith.constant 0 : index
    %c0_3 = arith.constant 0 : index
    %1 = vector.load %arg2[%c0_1, %c0_2, %c0_3] : memref<3x128x128xf32, #tpu.memory_space<vmem>>, vector<1x128x128xf32>
    %2 = vector.shape_cast %1 : vector<1x128x128xf32> to vector<128x128xf32>
    %c1 = arith.constant 1 : index
    %c0_4 = arith.constant 0 : index
    %c0_5 = arith.constant 0 : index
    %3 = vector.load %arg2[%c1, %c0_4, %c0_5] : memref<3x128x128xf32, #tpu.memory_space<vmem>>, vector<1x128x128xf32>
    %4 = vector.shape_cast %3 : vector<1x128x128xf32> to vector<128x128xf32>
    %c2 = arith.constant 2 : index
    %c0_6 = arith.constant 0 : index
    %c0_7 = arith.constant 0 : index
    %5 = vector.load %arg2[%c2, %c0_6, %c0_7] : memref<3x128x128xf32, #tpu.memory_space<vmem>>, vector<1x128x128xf32>
    %6 = vector.shape_cast %5 : vector<1x128x128xf32> to vector<128x128xf32>
    %c0_8 = arith.constant 0 : index
    %c0_9 = arith.constant 0 : index
    %7 = vector.load %arg3[%c0_8, %c0_9] : memref<3x128xf32, #tpu.memory_space<vmem>>, vector<1x128xf32>
    %c1_10 = arith.constant 1 : index
    %c0_11 = arith.constant 0 : index
    %8 = vector.load %arg3[%c1_10, %c0_11] : memref<3x128xf32, #tpu.memory_space<vmem>>, vector<1x128xf32>
    %c2_12 = arith.constant 2 : index
    %c0_13 = arith.constant 0 : index
    %9 = vector.load %arg3[%c2_12, %c0_13] : memref<3x128xf32, #tpu.memory_space<vmem>>, vector<1x128xf32>
    %cst = arith.constant dense<0.000000e+00> : vector<8x128xf32>
    %10 = tpu.matmul %0, %2, %cst {dimension_numbers = #tpu.dot_dimension_numbers<[1], [0], [0], [1], [0, 0, 1, 1], [], []>} : vector<8x128xf32>, vector<128x128xf32>, vector<8x128xf32> -> vector<8x128xf32>
    %11 = vector.broadcast %7 : vector<1x128xf32> to vector<8x128xf32>
    %12 = arith.addf %10, %11 : vector<8x128xf32>
    %cst_14 = arith.constant 0.000000e+00 : f32
    %13 = vector.broadcast %cst_14 : f32 to vector<8x128xf32>
    %14 = arith.maximumf %12, %13 : vector<8x128xf32>
    %cst_15 = arith.constant dense<0.000000e+00> : vector<8x128xf32>
    %15 = tpu.matmul %14, %4, %cst_15 {dimension_numbers = #tpu.dot_dimension_numbers<[1], [0], [0], [1], [0, 0, 1, 1], [], []>} : vector<8x128xf32>, vector<128x128xf32>, vector<8x128xf32> -> vector<8x128xf32>
    %16 = vector.broadcast %8 : vector<1x128xf32> to vector<8x128xf32>
    %17 = arith.addf %15, %16 : vector<8x128xf32>
    %cst_16 = arith.constant 0.000000e+00 : f32
    %18 = vector.broadcast %cst_16 : f32 to vector<8x128xf32>
    %19 = arith.maximumf %17, %18 : vector<8x128xf32>
    %cst_17 = arith.constant dense<0.000000e+00> : vector<8x128xf32>
    %20 = tpu.matmul %19, %6, %cst_17 {dimension_numbers = #tpu.dot_dimension_numbers<[1], [0], [0], [1], [0, 0, 1, 1], [], []>} : vector<8x128xf32>, vector<128x128xf32>, vector<8x128xf32> -> vector<8x128xf32>
    %21 = vector.broadcast %9 : vector<1x128xf32> to vector<8x128xf32>
    %22 = arith.addf %20, %21 : vector<8x128xf32>
    %cst_18 = arith.constant dense<0xFF800000> : vector<8xf32>
    %23 = vector.multi_reduction <maximumf>, %22, %cst_18 [1] : vector<8x128xf32> to vector<8xf32>
    %24 = vector.shape_cast %23 : vector<8xf32> to vector<8x1xf32>
    %25 = vector.broadcast %24 : vector<8x1xf32> to vector<8x128xf32>
    %26 = arith.subf %22, %25 : vector<8x128xf32>
    %27 = math.exp %26 : vector<8x128xf32>
    %cst_19 = arith.constant dense<0.000000e+00> : vector<8xf32>
    %28 = vector.multi_reduction <add>, %27, %cst_19 [1] : vector<8x128xf32> to vector<8xf32>
    %29 = vector.shape_cast %28 : vector<8xf32> to vector<8x1xf32>
    %30 = tpu.reciprocal %29 : vector<8x1xf32> -> vector<8x1xf32>
    %31 = vector.broadcast %30 : vector<8x1xf32> to vector<8x128xf32>
    %32 = arith.mulf %27, %31 : vector<8x128xf32>
    %c0_20 = arith.constant 0 : index
    %c0_21 = arith.constant 0 : index
    %33 = vector.load %arg4[%c0_20, %c0_21] : memref<8x128xf32, #tpu.memory_space<vmem>>, vector<8x128xf32>
    tpu.vector_store %arg4[%c0_20, %c0_21], %32 {strides = array<i32>} : memref<8x128xf32, #tpu.memory_space<vmem>>, vector<8x128xf32>,
    return
  }
  func.func @transform_0(%arg0: i32) -> (i32, i32) {
    %c0_i32 = arith.constant 0 : i32
    %c0_i32_0 = arith.constant 0 : i32
    return %arg0, %c0_i32 : i32, i32
  }
  func.func @transform_1(%arg0: i32) -> (i32, i32, i32) {
    %c0_i32 = arith.constant 0 : i32
    %c0_i32_0 = arith.constant 0 : i32
    %c0_i32_1 = arith.constant 0 : i32
    %c0_i32_2 = arith.constant 0 : i32
    return %c0_i32, %c0_i32_0, %c0_i32_1 : i32, i32, i32
  }
  func.func @transform_2(%arg0: i32) -> (i32, i32) {
    %c0_i32 = arith.constant 0 : i32
    %c0_i32_0 = arith.constant 0 : i32
    %c0_i32_1 = arith.constant 0 : i32
    return %c0_i32, %c0_i32_0 : i32, i32
  }
  func.func @transform_3(%arg0: i32) -> (i32, i32) {
    %c0_i32 = arith.constant 0 : i32
    %c0_i32_0 = arith.constant 0 : i32
    return %arg0, %c0_i32 : i32, i32
  }
}

</mosaic_0001>

<bundles_post_ra>
// kernel: actor_forward.1
= control target key start
LH: loop header
LB: loop body
LE: loop exit
PB: predicated region body
PF: predicated region fallthrough
CT: control target
= control target key end

     0   :  { %8 = vsyncpa [#allocation3], 0  ;;  %s586_s12 = smov [#allocation2]   ;;  %s669_s0 = inlined_call_operand.vmem [shape: f32[8,128], index: 0, kind: input, shape index: {}]   ;;  %s670_s1 = inlined_call_operand.hbm [shape: f32[3,128,128], index: 1, kind: input, shape index: {}]   ;;  %s671_s2 = inlined_call_operand.vmem [shape: f32[3,128], index: 2, kind: input, shape index: {}]   ;;  %s672_s3 = inlined_call_operand.vmem [shape: f32[8,128], index: 3, kind: output, shape index: {}]  }
   0x1   :  { %s16_s13 = sshll.u32 %s586_s12, 4  ;;  %s562_s16 = scalar_lea.hbm %s670_s1, 6144  ;;  %s17_s13 = int_to_ptr.vmem [resolvable:$true] %s16_s13 }
   0x2   :  { %p563_p0 = scmp.ne.s32.totalorder %s670_s1, %s562_s16  ;;  %p566_p1 = scmp.lt.u32.totalorder %s562_s16, %s670_s1 }
   0x4   :  { %p568_p2 = pnand %p566_p1, %p563_p0 }
   0x6   :  { %571 = shalt.err (!%p568_p2)
}
   0x7   :  { %s572_s21 = scalar_lea.vmem %s17_s13, 6144  ;;  %p577_p4 = scmp.lt.s32.totalorder %s17_s13, %s17_s13 }
   0x8   :  { %p573_p3 = scmp.ne.s32.totalorder %s17_s13, %s572_s21  ;;  %p578_p5 = scmp.lt.s32.totalorder %s572_s21, %s572_s21 }
   0xa   :  { %p579_p6 = por %p578_p5, %p577_p4 }
   0xc   :  { %p580_p7 = pnand %p579_p6, %p573_p3 }
   0xe   :  { %583 = shalt.err (!%p580_p7)
}
   0xf   :  { %s587_s22 = smov 128   ;;  %s588_s23 = smov 8  }
  0x10   :  { %22 = dma.hbm_to_vmem [thread:$0]  %s670_s1, 6144, %s17_s13, [#allocation3], %s587_s22, %s587_s22, %s588_s23  }
  0x11   :  { %584 = dma.done.wait [#allocation3], 6144  }
  0x12   :  { %585 = vsyncadd [#allocation3], 4294961152  ;;  %v589_v0 = vmov 0.0|0.0   ;;  %vm590_vm0 = vmmov 0   ;;  %v591_v1 = vmov 0.0   ;;  %v29_v2 = vld [vmem:[#allocation2] sm:$0xff] }
  0x13   :  { %480 = vmatprep.subr.bf16.mxu0 %v589_v0  ;;  %407 = vmatprep.mubr.msk.f32.mxu0 %vm590_vm0, %v591_v1  ;;  %v30_v3 = vld [vmem:[#allocation2 + $0x8] sm:$0xff]  ;;  %v31_v4 = vld [vmem:[#allocation2 + $0x10] sm:$0xff]  ;;  %v32_v6 = vld [vmem:[#allocation2 + $0x18] sm:$0xff] }
  0x14   :  { %504 = vmatprep.subr.bf16.mxu1 %v589_v0  ;;  %442 = vmatprep.mubr.msk.f32.mxu1 %vm590_vm0, %v591_v1  ;;  %v481_v5 = vpack.c.bf16 %v30_v3, %v29_v2  ;;  %v484_v7 = vpack.c.bf16 %v32_v6, %v31_v4  ;;  %v33_v8 = vld [vmem:[#allocation2 + $0x20] sm:$0xff]  ;;  %v34_v9 = vld [vmem:[#allocation2 + $0x28] sm:$0xff]  ;;  %v48_v12 = vld [vmem:[#allocation2 + $0x90] sm:$0xff] }
  0x15   :  { %v46_v10 = vld [vmem:[#allocation2 + $0x80] sm:$0xff]  ;;  %v47_v11 = vld [vmem:[#allocation2 + $0x88] sm:$0xff]  ;;  %v49_v13 = vld [vmem:[#allocation2 + $0x98] sm:$0xff]  ;;  %v487_v14 = vpack.c.bf16 %v34_v9, %v33_v8 }
  0x16   :  { %482 = vmatpush3.bf16.msra.mxu0 %v481_v5  ;;  %v505_v15 = vpack.c.bf16 %v47_v11, %v46_v10  ;;  %v35_v16 = vld [vmem:[#allocation2 + $0x30] sm:$0xff]  ;;  %v36_v17 = vld [vmem:[#allocation2 + $0x38] sm:$0xff]  ;;  %v508_v18 = vpack.c.bf16 %v49_v13, %v48_v12  ;;  %v50_v19 = vld [vmem:[#allocation2 + $0xa0] sm:$0xff] }
  0x17   :  { %483 = vmatprep.subr.bf16.mxu0 %v589_v0  ;;  %v51_v20 = vld [vmem:[#allocation2 + $0xa8] sm:$0xff]  ;;  %v490_v21 = vpack.c.bf16 %v36_v17, %v35_v16  ;;  %v37_v22 = vld [vmem:[#allocation2 + $0x40] sm:$0xff]  ;;  %v52_v25 = vld [vmem:[#allocation2 + $0xb0] sm:$0xff] }
  0x18   :  { %506 = vmatpush3.bf16.msra.mxu1 %v505_v15  ;;  %v38_v23 = vld [vmem:[#allocation2 + $0x48] sm:$0xff]  ;;  %v511_v24 = vpack.c.bf16 %v51_v20, %v50_v19  ;;  %v53_v26 = vld [vmem:[#allocation2 + $0xb8] sm:$0xff]  ;;  %v39_v28 = vld [vmem:[#allocation2 + $0x50] sm:$0xff] }
  0x19   :  { %507 = vmatprep.subr.bf16.mxu1 %v589_v0  ;;  %v493_v27 = vpack.c.bf16 %v38_v23, %v37_v22  ;;  %v40_v29 = vld [vmem:[#allocation2 + $0x58] sm:$0xff]  ;;  %v514_v30 = vpack.c.bf16 %v53_v26, %v52_v25  ;;  %v54_v31 = vld [vmem:[#allocation2 + $0xc0] sm:$0xff]  ;;  %v55_v32 = vld [vmem:[#allocation2 + $0xc8] sm:$0xff] }
  0x1a   :  { %485 = vmatpush3.bf16.msra.mxu0 %v484_v7  ;;  %v496_v33 = vpack.c.bf16 %v40_v29, %v39_v28  ;;  %v41_v34 = vld [vmem:[#allocation2 + $0x60] sm:$0xff]  ;;  %v42_v35 = vld [vmem:[#allocation2 + $0x68] sm:$0xff]  ;;  %v517_v36 = vpack.c.bf16 %v55_v32, %v54_v31  ;;  %v56_v37 = vld [vmem:[#allocation2 + $0xd0] sm:$0xff] }
  0x1b   :  { %486 = vmatprep.subr.bf16.mxu0 %v589_v0  ;;  %v57_v38 = vld [vmem:[#allocation2 + $0xd8] sm:$0xff]  ;;  %v499_v39 = vpack.c.bf16 %v42_v35, %v41_v34  ;;  %v43_v40 = vld [vmem:[#allocation2 + $0x70] sm:$0xff]  ;;  %v58_v43 = vld [vmem:[#allocation2 + $0xe0] sm:$0xff] }
  0x1c   :  { %509 = vmatpush3.bf16.msra.mxu1 %v508_v18  ;;  %v44_v41 = vld [vmem:[#allocation2 + $0x78] sm:$0xff]  ;;  %v520_v42 = vpack.c.bf16 %v57_v38, %v56_v37  ;;  %v59_v44 = vld [vmem:[#allocation2 + $0xe8] sm:$0xff]  ;;  %v28_v47 = vld [vmem:[%s669_s0] sm:$0xff] }
  0x1d   :  { %510 = vmatprep.subr.bf16.mxu1 %v589_v0  ;;  %v502_v45 = vpack.c.bf16 %v44_v41, %v43_v40  ;;  %v523_v46 = vpack.c.bf16 %v59_v44, %v58_v43  ;;  %v60_v48 = vld [vmem:[#allocation2 + $0xf0] sm:$0xff]  ;;  %v61_v49 = vld [vmem:[#allocation2 + $0xf8] sm:$0xff]  ;;  %v63_v51 = vld [vmem:[#allocation2 + $0x100] sm:$0xff] }
  0x1e   :  { %488 = vmatpush3.bf16.msra.mxu0 %v487_v14  ;;  %v526_v50 = vpack.c.bf16 %v61_v49, %v60_v48  ;;  %v64_v52 = vld [vmem:[#allocation2 + $0x108] sm:$0xff]  ;;  %v65_v53 = vld [vmem:[#allocation2 + $0x110] sm:$0xff]  ;;  %v66_v55 = vld [vmem:[#allocation2 + $0x118] sm:$0xff] }
  0x1f   :  { %489 = vmatprep.subr.bf16.mxu0 %v589_v0  ;;  %v529_v54 = vpack.c.bf16 %v64_v52, %v63_v51  ;;  %v532_v56 = vpack.c.bf16 %v66_v55, %v65_v53  ;;  %v67_v57 = vld [vmem:[#allocation2 + $0x120] sm:$0xff]  ;;  %v68_v58 = vld [vmem:[#allocation2 + $0x128] sm:$0xff]  ;;  %v69_v60 = vld [vmem:[#allocation2 + $0x130] sm:$0xff] }
  0x20   :  { %512 = vmatpush3.bf16.msra.mxu1 %v511_v24  ;;  %v535_v59 = vpack.c.bf16 %v68_v58, %v67_v57  ;;  %v70_v61 = vld [vmem:[#allocation2 + $0x138] sm:$0xff]  ;;  %v71_v63 = vld [vmem:[#allocation2 + $0x140] sm:$0xff]  ;;  %v73_v3 = vld [vmem:[#allocation2 + $0x150] sm:$0xff] }
  0x21   :  { %513 = vmatprep.subr.bf16.mxu1 %v589_v0  ;;  %v538_v62 = vpack.c.bf16 %v70_v61, %v69_v60  ;;  %v74_v4 = vld [vmem:[#allocation2 + $0x158] sm:$0xff]  ;;  %v75_v6 = vld [vmem:[#allocation2 + $0x160] sm:$0xff]  ;;  %v76_v7 = vld [vmem:[#allocation2 + $0x168] sm:$0xff] }
  0x22   :  { %491 = vmatpush3.bf16.msra.mxu0 %v490_v21  ;;  %v544_v5 = vpack.c.bf16 %v74_v4, %v73_v3  ;;  %v547_v8 = vpack.c.bf16 %v76_v7, %v75_v6  ;;  %v321_v9 = vld [vmem:[%s671_s2] ss:$0 sm:$0xff]  ;;  %v77_v14 = vld [vmem:[#allocation2 + $0x170] sm:$0xff]  ;;  %v78_v15 = vld [vmem:[#allocation2 + $0x178] sm:$0xff] }
  0x23   :  { %492 = vmatprep.subr.bf16.mxu0 %v589_v0  ;;  %v550_v16 = vpack.c.bf16 %v78_v15, %v77_v14  ;;  %v322_v17 = vld [vmem:[%s671_s2 + $0x1] ss:$0 sm:$0xff]  ;;  %v323_v21 = vld [vmem:[%s671_s2 + $0x2] ss:$0 sm:$0xff] }
  0x24   :  { %515 = vmatpush3.bf16.msra.mxu1 %v514_v30 }
  0x25   :  { %516 = vmatprep.subr.bf16.mxu1 %v589_v0 }
  0x26   :  { %494 = vmatpush3.bf16.msra.mxu0 %v493_v27 }
  0x27   :  { %495 = vmatprep.subr.bf16.mxu0 %v589_v0 }
  0x28   :  { %518 = vmatpush3.bf16.msra.mxu1 %v517_v36 }
  0x29   :  { %519 = vmatprep.subr.bf16.mxu1 %v589_v0 }
  0x2a   :  { %497 = vmatpush3.bf16.msra.mxu0 %v496_v33 }
  0x2b   :  { %498 = vmatprep.subr.bf16.mxu0 %v589_v0 }
  0x2c   :  { %521 = vmatpush3.bf16.msra.mxu1 %v520_v42 }
  0x2d   :  { %522 = vmatprep.subr.bf16.mxu1 %v589_v0 }
  0x2e   :  { %500 = vmatpush3.bf16.msra.mxu0 %v499_v39 }
  0x2f   :  { %501 = vmatprep.subr.bf16.mxu0 %v589_v0 }
  0x30   :  { %524 = vmatpush3.bf16.msra.mxu1 %v523_v46 }
  0x31   :  { %525 = vmatprep.subr.bf16.mxu1 %v589_v0 }
  0x32   :  { %503 = vmatpush3.bf16.msra.mxu0 %v502_v45 }
  0x33   :  { %528 = vmatprep.subr.bf16.mxu0 %v589_v0 }
  0x34   :  { %527 = vmatpush3.bf16.msra.mxu1 %v526_v50 }
  0x35   :  { %408 = vmatmul.mubr.f32.vlgmr.msra.gmra.mrb[0].mxu0 %v28_v47 }
  0x36   :  { %477 = vmatprep.mubr.msk.f32.mxu0 %vm590_vm0, %v591_v1  ;;  %530 = vmatpush3.bf16.msra.mxu0 %v529_v54  ;;  %v72_v1 = vld [vmem:[#allocation2 + $0x148] sm:$0xff] }
  0x37   :  { %531 = vmatprep.subr.bf16.mxu0 %v589_v0  ;;  %v541_v2 = vpack.c.bf16 %v72_v1, %v71_v63 }
  0x3a   :  { %533 = vmatpush3.bf16.msra.mxu0 %v532_v56 }
  0x3b   :  { %534 = vmatprep.subr.bf16.mxu0 %v589_v0 }
  0x3e   :  { %536 = vmatpush3.bf16.msra.mxu0 %v535_v59 }
  0x3f   :  { %537 = vmatprep.subr.bf16.mxu0 %v589_v0 }
  0x42   :  { %539 = vmatpush3.bf16.msra.mxu0 %v538_v62 }
  0x43   :  { %540 = vmatprep.subr.bf16.mxu0 %v589_v0 }
  0x46   :  { %542 = vmatpush3.bf16.msra.mxu0 %v541_v2 }
  0x47   :  { %543 = vmatprep.subr.bf16.mxu0 %v589_v0 }
  0x4a   :  { %545 = vmatpush3.bf16.msra.mxu0 %v544_v5 }
  0x4b   :  { %546 = vmatprep.subr.bf16.mxu0 %v589_v0 }
  0x4e   :  { %548 = vmatpush3.bf16.msra.mxu0 %v547_v8 }
  0x4f   :  { %549 = vmatprep.subr.bf16.mxu0 %v589_v0 }
  0x52   :  { %551 = vmatpush3.bf16.msra.mxu0 %v550_v16 }
 0x108   :  { %v152_v10 = vpop.f32.mrb[0].mxu0 }
 0x109   :  { %v153_v11 = vadd.f32 %v321_v9, %v152_v10  ;;  %v409_v12 = vpop.f32.mrb[1].mxu0 }
 0x10b   :  { %v156_v13 = vmax.f32 %v153_v11, 0.0 }
 0x10d   :  { %443 = vmatmul.mubr.f32.vlgmr.msra.gmra.mrb[0].mxu1 %v156_v13 }
 0x1e0   :  { %v227_v18 = vpop.f32.mrb[0].mxu1 }
 0x1e1   :  { %v228_v19 = vadd.f32 %v322_v17, %v227_v18  ;;  %v444_v0 = vpop.f32.mrb[1].mxu1 }
 0x1e3   :  { %v231_v20 = vmax.f32 %v228_v19, 0.0 }
 0x1e5   :  { %478 = vmatmul.mubr.f32.vlgmr.msra.gmra.mrb[2].mxu0 %v231_v20 }
 0x2b8   :  { %v302_v22 = vpop.f32.mrb[2].mxu0 }
 0x2b9   :  { %v303_v23 = vadd.f32 %v323_v21, %v302_v22  ;;  %v479_v24 = vpop.f32.mrb[3].mxu0 }
 0x2bb   :  { %306 = vmax.xlane.f32.xlu0 %v303_v23 }
 0x348   :  { %v307_v25 = vpop.xlane.xlu0 %306 }
 0x349   :  { %v308_v26 = vsub.f32 %v303_v23, %v307_v25 }
 0x34b   :  { %v309_v27 = vmul.f32 1.442695, %v308_v26 }
 0x34d   :  { %558 = vpow2.f32 %v309_v27 }
 0x357   :  { %v559_v28 = vpop.eup %558 }
 0x358   :  { %311 = vadd.xlane.f32.xlu0 %v559_v28 }
 0x3e5   :  { %v312_v29 = vpop.xlane.xlu0 %311 }
 0x3e6   :  { %560 = vrcp.f32 %v312_v29 }
 0x3f0   :  { %v561_v30 = vpop.eup %560 }
 0x3f1   :  { %v314_v31 = vmul.f32 %v561_v30, %v559_v28 }
 0x3f3   :  { %315 = vst [vmem:[%s672_s3] sm:$0xff] %v314_v31 }
 0x3f4   :  { %320 = vsyncpa [#allocation3], 1 }

</bundles_post_ra>
